<compile_context>
chip_gen: v6e
topology: v6e:2x2x1
jax: 0.10.0
libtpu: 0.0.40
codegen_flags: <defaults>
</compile_context>

<pallas_src>
import jax
import jax.numpy as jnp
from jax.experimental import pallas as pl
from jax.experimental.pallas import tpu as pltpu


def _round_up(x, m):
    return ((x + m - 1) // m) * m


# --------------------------------------------------------------------------- kernel


def _head_logits(x, w0, b0, w1, b1, wo, bo):
    """ConditionalDistributionZ MLP (2 ReLU hidden layers + linear out) -> RAW logits."""
    cd = w0.dtype  # matmul compute dtype (bf16 recommended on v5e/v6e/v7x)
    h = jnp.maximum(
        jnp.dot(x.astype(cd), w0, preferred_element_type=jnp.float32) + b0, 0.0)
    h = jnp.maximum(
        jnp.dot(h.astype(cd), w1, preferred_element_type=jnp.float32) + b1, 0.0)
    return jnp.dot(h.astype(cd), wo, preferred_element_type=jnp.float32) + bo


def mico_tile_kernel(nvalid_ref, doc_ref, qry_ref,
                     wp0_ref, wp1_ref, wpo_ref,
                     wq0_ref, wq1_ref, wqo_ref,
                     slab_ref, out_ref):
    """One batch tile. Emits per-tile partial sums:
         lane 0: sum_rows( lse(zq) - sum_k p*zq )   (h_z_cond numerator)
         lane 1: sum_rows( sum_k p * qz_logits )    (h_z inner product)
    using the identity  -sum_k p*log softmax(z) = lse(z) - sum_k p*z  (sum_k p = 1).
    """
    H = wp0_ref.shape[1]
    K = wpo_ref.shape[1]

    slab = slab_ref[...]                                    # (8, W) f32 bias/qz slab
    bp0, bp1, bpo = slab[0:1, :H], slab[1:2, :H], slab[2:3, :K]
    bq0, bq1, bqo = slab[3:4, :H], slab[4:5, :H], slab[5:6, :K]
    qz = slab[6:7, :K]                                      # raw qz logits

    zp = _head_logits(doc_ref[...], wp0_ref[...], bp0,
                      wp1_ref[...], bp1, wpo_ref[...], bpo)  # P(Z|Y) logits
    zq = _head_logits(qry_ref[...], wq0_ref[...], bq0,
                      wq1_ref[...], bq1, wqo_ref[...], bqo)  # P(Z|X) logits

    # p = softmax(zp); normalizer factored to a (TB,1) EUP reciprocal (free slot).
    mp = jnp.max(zp, axis=-1, keepdims=True)
    ep = jnp.exp(zp - mp)
    p = ep * pl.reciprocal(jnp.sum(ep, axis=-1, keepdims=True), approx=True)

    # logsumexp(zq) per row (stable).
    mq = jnp.max(zq, axis=-1, keepdims=True)
    lse_q = mq + jnp.log(jnp.sum(jnp.exp(zq - mq), axis=-1, keepdims=True))

    # Mask rows that are batch padding (global row id >= true batch size).
    tb = doc_ref.shape[0]
    row0 = pl.program_id(0) * tb
    gid = row0 + jax.lax.broadcasted_iota(jnp.int32, (tb, 1), 0)
    valid = (gid < nvalid_ref[0]).astype(jnp.float32)

    s1 = jnp.sum(valid * (lse_q - jnp.sum(p * zq, axis=-1, keepdims=True)))
    s2 = jnp.sum(valid * jnp.sum(p * qz, axis=-1, keepdims=True))

    lane = jax.lax.broadcasted_iota(jnp.int32, out_ref.shape, 2)
    out_ref[...] = jnp.where(lane == 0, s1,
                             jnp.where(lane == 1, s2, 0.0)).astype(out_ref.dtype)


# --------------------------------------------------------------------------- wrapper


def prepare_mico_params(params, matmul_dtype=jnp.bfloat16):
    """One-time (out of hot path) weight cast + packing of the tiny bias/qz inputs
    into a single (8, W) VMEM slab (one DMA descriptor instead of seven)."""
    (wp0, bp0), (wp1, bp1), (wpo, bpo) = params["p"]
    (wq0, bq0), (wq1, bq1), (wqo, bqo) = params["q"]
    qz = params["qz_logits"].astype(jnp.float32).reshape(1, -1)
    D, H = wp0.shape
    K = wpo.shape[1]
    W = _round_up(max(H, K), 128)

    def row(b):
        b = b.astype(jnp.float32).reshape(1, -1)
        return jnp.pad(b, ((0, 0), (0, W - b.shape[1])))

    slab = jnp.concatenate(
        [row(bp0), row(bp1), row(bpo), row(bq0), row(bq1), row(bqo), row(qz),
         jnp.zeros((1, W), jnp.float32)], axis=0)            # (8, W) -> tile aligned
    weights = tuple(w.astype(matmul_dtype) for w in (wp0, wp1, wpo, wq0, wq1, wqo))
    return {"weights": weights, "slab": slab, "qz_logits": qz, "dims": (D, H, K)}


def mico_forward(doc_emb, qry_emb, prepared, entropy_weight, *,
                 block_rows=128, vmem_limit_bytes=None):
    """Fused MICO 'update_all' forward. Returns {'loss','h_z_cond','h_z'} scalars."""
    D, H, K = prepared["dims"]
    wp0, wp1, wpo, wq0, wq1, wqo = prepared["weights"]
    slab = prepared["slab"]

    B = doc_emb.shape[0]
    tb = min(_round_up(block_rows, 8), _round_up(B, 8))      # (8,128)-aligned tile
    b_pad = _round_up(B, tb)
    num_tiles = b_pad // tb
    pad = b_pad - B

    doc = jnp.pad(doc_emb.astype(jnp.float32), ((0, pad), (0, 0)))
    qry = jnp.pad(qry_emb.astype(jnp.float32), ((0, pad), (0, 0)))
    nvalid = jnp.array([B], dtype=jnp.int32)                 # scalar-prefetch (SMEM)

    def const_spec(a):      # weights / slab: constant block index -> resident in VMEM
        return pl.BlockSpec(a.shape, lambda i, n: (0,) * a.ndim)

    grid_spec = pltpu.PrefetchScalarGridSpec(
        num_scalar_prefetch=1,
        grid=(num_tiles,),
        in_specs=[
            pl.BlockSpec((tb, D), lambda i, n: (i, 0)),      # doc tile
            pl.BlockSpec((tb, D), lambda i, n: (i, 0)),      # query tile
            const_spec(wp0), const_spec(wp1), const_spec(wpo),
            const_spec(wq0), const_spec(wq1), const_spec(wqo),
            const_spec(slab),
        ],
        out_specs=pl.BlockSpec((1, 8, 128), lambda i, n: (i, 0, 0)),
    )

    weight_bytes = sum(int(a.size) * a.dtype.itemsize
                       for a in (wp0, wp1, wpo, wq0, wq1, wqo, slab))
    cost = pl.CostEstimate(
        flops=int(4 * b_pad * (D * H + H * H + H * K)),
        transcendentals=int(2 * b_pad * K),
        bytes_accessed=int(weight_bytes + 2 * b_pad * D * 4 + num_tiles * 8 * 128 * 4))

    cp = dict(dimension_semantics=("parallel",))             # v7x: both TensorCores
    if vmem_limit_bytes is not None:
        cp["vmem_limit_bytes"] = int(vmem_limit_bytes)

    parts = pl.pallas_call(
        mico_tile_kernel,
        grid_spec=grid_spec,
        out_shape=jax.ShapeDtypeStruct((num_tiles, 8, 128), jnp.float32),
        compiler_params=pltpu.CompilerParams(**cp),
        cost_estimate=cost,
    )(nvalid, doc, qry, wp0, wp1, wpo, wq0, wq1, wqo, slab)

    # Tiny final reduction in the wrapper (megacore-safe; no retrace on entropy_weight).
    s1 = jnp.sum(parts[:, 0, 0])
    s2 = jnp.sum(parts[:, 0, 1])
    ew = jnp.asarray(entropy_weight, jnp.float32)
    lse_qz = jax.nn.logsumexp(prepared["qz_logits"])
    h_z_cond = s1 / B
    h_z = lse_qz - s2 / B
    loss = h_z_cond - ew * h_z
    return {"loss": loss, "h_z_cond": h_z_cond, "h_z": h_z}


# --------------------------------------------------------------------------- reference


def ref_forward(doc, qry, params, entropy_weight):
    """Pure-JAX reference of the same forward semantics (numerically stable)."""
    def logits(x, layers):
        (w0, b0), (w1, b1), (wo, bo) = layers
        h = jax.nn.relu(x @ w0 + b0)
        h = jax.nn.relu(h @ w1 + b1)
        return h @ wo + bo

    p = jax.nn.softmax(logits(doc, params["p"]), axis=-1)
    log_q = jax.nn.log_softmax(logits(qry, params["q"]), axis=-1)
    log_qz = jax.nn.log_softmax(params["qz_logits"], axis=-1)
    h_z_cond = jnp.mean(jnp.sum(-p * log_q, axis=-1))
    h_z = jnp.mean(jnp.sum(-p * log_qz, axis=-1))
    return h_z_cond - entropy_weight * h_z, h_z_cond, h_z


# --------------------------------------------------------------------------- test


if __name__ == "__main__":
    # Hyper-params implied by the module: dim_input=D, dim_hidden=H,
    # number_clusters=K, num_layers_posterior=2, entropy_weight.
    B, D, H, K = 20, 128, 128, 128        # B not a multiple of 8 -> exercises masking
    ENTROPY_WEIGHT = 0.1
    INIT_STD = 0.02                       # get_init_function(hparams.init): normal init

    key = jax.random.PRNGKey(0)
    keys = jax.random.split(key, 16)

    doc_emb = jax.random.normal(keys[0], (B, D), jnp.float32)
    qry_emb = jax.random.normal(keys[1], (B, D), jnp.float32)

    def init_head(ks):
        dims = [(D, H), (H, H), (H, K)]
        return [(INIT_STD * jax.random.normal(k, dd, jnp.float32),
                 jnp.zeros((1, dd[1]), jnp.float32)) for k, dd in zip(ks, dims)]

    params = {
        "p": init_head(keys[2:5]),                                              # p_z_y
        "q": init_head(keys[5:8]),                                              # q_z_x
        "qz_logits": INIT_STD * jax.random.normal(keys[8], (1, K), jnp.float32),  # q_z
    }

    ref_loss, ref_hzc, ref_hz = ref_forward(doc_emb, qry_emb, params, ENTROPY_WEIGHT)

    def check(out, rtol, atol):
        assert jnp.allclose(out["loss"], ref_loss, rtol=rtol, atol=atol), (out["loss"], ref_loss)
        assert jnp.allclose(out["h_z_cond"], ref_hzc, rtol=rtol, atol=atol), (out["h_z_cond"], ref_hzc)
        assert jnp.allclose(out["h_z"], ref_hz, rtol=rtol, atol=atol), (out["h_z"], ref_hz)

    # 1) f32 weights, single batch tile.
    prep_f32 = prepare_mico_params(params, matmul_dtype=jnp.float32)
    out = jax.block_until_ready(
        mico_forward(doc_emb, qry_emb, prep_f32, ENTROPY_WEIGHT, block_rows=128))
    check(out, 1e-4, 2e-4)

    # 2) f32 weights, multi-tile grid (block_rows=8 -> 3 tiles, last tile masked).
    out = jax.block_until_ready(
        mico_forward(doc_emb, qry_emb, prep_f32, ENTROPY_WEIGHT, block_rows=8))
    check(out, 1e-4, 2e-4)

    # 3) bf16 weights (recommended default on v5e/v6e/v7x: halves weight-DMA bytes),
    #    multi-tile grid -- looser tolerance vs the f32 reference.
    prep_bf16 = prepare_mico_params(params, matmul_dtype=jnp.bfloat16)
    out = jax.block_until_ready(
        mico_forward(doc_emb, qry_emb, prep_bf16, ENTROPY_WEIGHT, block_rows=8))
    check(out, 3e-2, 3e-2)

    print("KERNEL_OK")
</pallas_src>

<mosaic_0001>
module attributes {stable_mosaic.version = 11 : i64} {
  func.func @mico_tile_kernel(%arg0: i32, %arg1: memref<1xi32, #tpu.memory_space<smem>>, %arg2: memref<24x128xf32, #tpu.memory_space<vmem>>, %arg3: memref<24x128xf32, #tpu.memory_space<vmem>>, %arg4: memref<128x128xf32, #tpu.memory_space<vmem>>, %arg5: memref<128x128xf32, #tpu.memory_space<vmem>>, %arg6: memref<128x128xf32, #tpu.memory_space<vmem>>, %arg7: memref<128x128xf32, #tpu.memory_space<vmem>>, %arg8: memref<128x128xf32, #tpu.memory_space<vmem>>, %arg9: memref<128x128xf32, #tpu.memory_space<vmem>>, %arg10: memref<8x128xf32, #tpu.memory_space<vmem>>, %arg11: memref<1x8x128xf32, #tpu.memory_space<vmem>>) attributes {dimension_semantics = [#tpu.dimension_semantics<parallel>], iteration_bounds = array<i64: 1>, scalar_prefetch = 1 : i64, scratch_operands = 0 : i64, tpu.core_type = #tpu.core_type<tc>, window_params = [{transform_indices = @transform_0, window_bounds = array<i64: 24, 128>}, {transform_indices = @transform_1, window_bounds = array<i64: 24, 128>}, {pipeline_mode = #tpu.pipeline_mode<synchronous>, transform_indices = @transform_2, window_bounds = array<i64: 128, 128>}, {pipeline_mode = #tpu.pipeline_mode<synchronous>, transform_indices = @transform_3, window_bounds = array<i64: 128, 128>}, {pipeline_mode = #tpu.pipeline_mode<synchronous>, transform_indices = @transform_4, window_bounds = array<i64: 128, 128>}, {pipeline_mode = #tpu.pipeline_mode<synchronous>, transform_indices = @transform_5, window_bounds = array<i64: 128, 128>}, {pipeline_mode = #tpu.pipeline_mode<synchronous>, transform_indices = @transform_6, window_bounds = array<i64: 128, 128>}, {pipeline_mode = #tpu.pipeline_mode<synchronous>, transform_indices = @transform_7, window_bounds = array<i64: 128, 128>}, {pipeline_mode = #tpu.pipeline_mode<synchronous>, transform_indices = @transform_8, window_bounds = array<i64: 8, 128>}, {transform_indices = @transform_9, window_bounds = array<i64: 1, 8, 128>}]} {
    %c0 = arith.constant 0 : index
    %c0_0 = arith.constant 0 : index
    %0 = vector.load %arg10[%c0, %c0_0] : memref<8x128xf32, #tpu.memory_space<vmem>>, vector<8x128xf32>
    %1 = vector.extract_strided_slice %0 {offsets = [0, 0], sizes = [1, 128], strides = [1, 1]} : vector<8x128xf32> to vector<1x128xf32>
    %2 = vector.extract_strided_slice %0 {offsets = [1, 0], sizes = [1, 128], strides = [1, 1]} : vector<8x128xf32> to vector<1x128xf32>
    %3 = vector.extract_strided_slice %0 {offsets = [2, 0], sizes = [1, 128], strides = [1, 1]} : vector<8x128xf32> to vector<1x128xf32>
    %4 = vector.extract_strided_slice %0 {offsets = [3, 0], sizes = [1, 128], strides = [1, 1]} : vector<8x128xf32> to vector<1x128xf32>
    %5 = vector.extract_strided_slice %0 {offsets = [4, 0], sizes = [1, 128], strides = [1, 1]} : vector<8x128xf32> to vector<1x128xf32>
    %6 = vector.extract_strided_slice %0 {offsets = [5, 0], sizes = [1, 128], strides = [1, 1]} : vector<8x128xf32> to vector<1x128xf32>
    %7 = vector.extract_strided_slice %0 {offsets = [6, 0], sizes = [1, 128], strides = [1, 1]} : vector<8x128xf32> to vector<1x128xf32>
    %c0_1 = arith.constant 0 : index
    %c0_2 = arith.constant 0 : index
    %8 = vector.load %arg2[%c0_1, %c0_2] : memref<24x128xf32, #tpu.memory_space<vmem>>, vector<24x128xf32>
    %c0_3 = arith.constant 0 : index
    %c0_4 = arith.constant 0 : index
    %9 = vector.load %arg4[%c0_3, %c0_4] : memref<128x128xf32, #tpu.memory_space<vmem>>, vector<128x128xf32>
    %c0_5 = arith.constant 0 : index
    %c0_6 = arith.constant 0 : index
    %10 = vector.load %arg5[%c0_5, %c0_6] : memref<128x128xf32, #tpu.memory_space<vmem>>, vector<128x128xf32>
    %c0_7 = arith.constant 0 : index
    %c0_8 = arith.constant 0 : index
    %11 = vector.load %arg6[%c0_7, %c0_8] : memref<128x128xf32, #tpu.memory_space<vmem>>, vector<128x128xf32>
    %cst = arith.constant dense<0.000000e+00> : vector<24x128xf32>
    %12 = tpu.matmul %8, %9, %cst {dimension_numbers = #tpu.dot_dimension_numbers<[1], [0], [0], [1], [0, 0, 1, 1], [], []>} : vector<24x128xf32>, vector<128x128xf32>, vector<24x128xf32> -> vector<24x128xf32>
    %13 = vector.broadcast %1 : vector<1x128xf32> to vector<24x128xf32>
    %14 = arith.addf %12, %13 : vector<24x128xf32>
    %cst_9 = arith.constant 0.000000e+00 : f32
    %15 = vector.broadcast %cst_9 : f32 to vector<24x128xf32>
    %16 = arith.maximumf %14, %15 : vector<24x128xf32>
    %cst_10 = arith.constant dense<0.000000e+00> : vector<24x128xf32>
    %17 = tpu.matmul %16, %10, %cst_10 {dimension_numbers = #tpu.dot_dimension_numbers<[1], [0], [0], [1], [0, 0, 1, 1], [], []>} : vector<24x128xf32>, vector<128x128xf32>, vector<24x128xf32> -> vector<24x128xf32>
    %18 = vector.broadcast %2 : vector<1x128xf32> to vector<24x128xf32>
    %19 = arith.addf %17, %18 : vector<24x128xf32>
    %cst_11 = arith.constant 0.000000e+00 : f32
    %20 = vector.broadcast %cst_11 : f32 to vector<24x128xf32>
    %21 = arith.maximumf %19, %20 : vector<24x128xf32>
    %cst_12 = arith.constant dense<0.000000e+00> : vector<24x128xf32>
    %22 = tpu.matmul %21, %11, %cst_12 {dimension_numbers = #tpu.dot_dimension_numbers<[1], [0], [0], [1], [0, 0, 1, 1], [], []>} : vector<24x128xf32>, vector<128x128xf32>, vector<24x128xf32> -> vector<24x128xf32>
    %23 = vector.broadcast %3 : vector<1x128xf32> to vector<24x128xf32>
    %24 = arith.addf %22, %23 : vector<24x128xf32>
    %c0_13 = arith.constant 0 : index
    %c0_14 = arith.constant 0 : index
    %25 = vector.load %arg3[%c0_13, %c0_14] : memref<24x128xf32, #tpu.memory_space<vmem>>, vector<24x128xf32>
    %c0_15 = arith.constant 0 : index
    %c0_16 = arith.constant 0 : index
    %26 = vector.load %arg7[%c0_15, %c0_16] : memref<128x128xf32, #tpu.memory_space<vmem>>, vector<128x128xf32>
    %c0_17 = arith.constant 0 : index
    %c0_18 = arith.constant 0 : index
    %27 = vector.load %arg8[%c0_17, %c0_18] : memref<128x128xf32, #tpu.memory_space<vmem>>, vector<128x128xf32>
    %c0_19 = arith.constant 0 : index
    %c0_20 = arith.constant 0 : index
    %28 = vector.load %arg9[%c0_19, %c0_20] : memref<128x128xf32, #tpu.memory_space<vmem>>, vector<128x128xf32>
    %cst_21 = arith.constant dense<0.000000e+00> : vector<24x128xf32>
    %29 = tpu.matmul %25, %26, %cst_21 {dimension_numbers = #tpu.dot_dimension_numbers<[1], [0], [0], [1], [0, 0, 1, 1], [], []>} : vector<24x128xf32>, vector<128x128xf32>, vector<24x128xf32> -> vector<24x128xf32>
    %30 = vector.broadcast %4 : vector<1x128xf32> to vector<24x128xf32>
    %31 = arith.addf %29, %30 : vector<24x128xf32>
    %cst_22 = arith.constant 0.000000e+00 : f32
    %32 = vector.broadcast %cst_22 : f32 to vector<24x128xf32>
    %33 = arith.maximumf %31, %32 : vector<24x128xf32>
    %cst_23 = arith.constant dense<0.000000e+00> : vector<24x128xf32>
    %34 = tpu.matmul %33, %27, %cst_23 {dimension_numbers = #tpu.dot_dimension_numbers<[1], [0], [0], [1], [0, 0, 1, 1], [], []>} : vector<24x128xf32>, vector<128x128xf32>, vector<24x128xf32> -> vector<24x128xf32>
    %35 = vector.broadcast %5 : vector<1x128xf32> to vector<24x128xf32>
    %36 = arith.addf %34, %35 : vector<24x128xf32>
    %cst_24 = arith.constant 0.000000e+00 : f32
    %37 = vector.broadcast %cst_24 : f32 to vector<24x128xf32>
    %38 = arith.maximumf %36, %37 : vector<24x128xf32>
    %cst_25 = arith.constant dense<0.000000e+00> : vector<24x128xf32>
    %39 = tpu.matmul %38, %28, %cst_25 {dimension_numbers = #tpu.dot_dimension_numbers<[1], [0], [0], [1], [0, 0, 1, 1], [], []>} : vector<24x128xf32>, vector<128x128xf32>, vector<24x128xf32> -> vector<24x128xf32>
    %40 = vector.broadcast %6 : vector<1x128xf32> to vector<24x128xf32>
    %41 = arith.addf %39, %40 : vector<24x128xf32>
    %cst_26 = arith.constant dense<0xFF800000> : vector<24xf32>
    %42 = vector.multi_reduction <maximumf>, %24, %cst_26 [1] : vector<24x128xf32> to vector<24xf32>
    %43 = vector.shape_cast %42 : vector<24xf32> to vector<24x1xf32>
    %44 = vector.broadcast %43 : vector<24x1xf32> to vector<24x128xf32>
    %45 = arith.subf %24, %44 : vector<24x128xf32>
    %46 = math.exp %45 : vector<24x128xf32>
    %cst_27 = arith.constant dense<0.000000e+00> : vector<24xf32>
    %47 = vector.multi_reduction <add>, %46, %cst_27 [1] : vector<24x128xf32> to vector<24xf32>
    %48 = vector.shape_cast %47 : vector<24xf32> to vector<24x1xf32>
    %49 = tpu.reciprocal %48 {approx = true} : vector<24x1xf32> -> vector<24x1xf32>
    %50 = vector.broadcast %49 : vector<24x1xf32> to vector<24x128xf32>
    %51 = arith.mulf %46, %50 : vector<24x128xf32>
    %cst_28 = arith.constant dense<0xFF800000> : vector<24xf32>
    %52 = vector.multi_reduction <maximumf>, %41, %cst_28 [1] : vector<24x128xf32> to vector<24xf32>
    %53 = vector.shape_cast %52 : vector<24xf32> to vector<24x1xf32>
    %54 = vector.broadcast %53 : vector<24x1xf32> to vector<24x128xf32>
    %55 = arith.subf %41, %54 : vector<24x128xf32>
    %56 = math.exp %55 : vector<24x128xf32>
    %cst_29 = arith.constant dense<0.000000e+00> : vector<24xf32>
    %57 = vector.multi_reduction <add>, %56, %cst_29 [1] : vector<24x128xf32> to vector<24xf32>
    %58 = vector.shape_cast %57 : vector<24xf32> to vector<24x1xf32>
    %59 = math.log %58 : vector<24x1xf32>
    %60 = arith.addf %53, %59 : vector<24x1xf32>
    %c24_i32 = arith.constant 24 : i32
    %61 = arith.muli %arg0, %c24_i32 : i32
    %62 = tpu.iota {dimensions = array<i32: 0>} : vector<24x1xi32>
    %63 = vector.broadcast %61 : i32 to vector<24x1xi32>
    %64 = arith.addi %63, %62 : vector<24x1xi32>
    %c0_30 = arith.constant 0 : index
    %65 = memref.load %arg1[%c0_30] : memref<1xi32, #tpu.memory_space<smem>>
    %66 = vector.broadcast %65 : i32 to vector<24x1xi32>
    %67 = arith.cmpi slt, %64, %66 : vector<24x1xi32>
    %68 = arith.extui %67 : vector<24x1xi1> to vector<24x1xi32>
    %69 = arith.sitofp %68 : vector<24x1xi32> to vector<24x1xf32>
    %70 = arith.mulf %51, %41 : vector<24x128xf32>
    %cst_31 = arith.constant dense<0.000000e+00> : vector<24xf32>
    %71 = vector.multi_reduction <add>, %70, %cst_31 [1] : vector<24x128xf32> to vector<24xf32>
    %72 = vector.shape_cast %71 : vector<24xf32> to vector<24x1xf32>
    %73 = arith.subf %60, %72 : vector<24x1xf32>
    %74 = arith.mulf %69, %73 : vector<24x1xf32>
    %75 = vector.shape_cast %74 : vector<24x1xf32> to vector<1x24x1xf32>
    %cst_32 = arith.constant dense<0.000000e+00> : vector<1xf32>
    %76 = vector.multi_reduction <add>, %75, %cst_32 [1, 2] : vector<1x24x1xf32> to vector<1xf32>
    %77 = vector.shape_cast %76 : vector<1xf32> to vector<1x1x1xf32>
    %78 = vector.extract %77[0, 0, 0] : f32 from vector<1x1x1xf32>
    %79 = vector.broadcast %7 : vector<1x128xf32> to vector<24x128xf32>
    %80 = arith.mulf %51, %79 : vector<24x128xf32>
    %cst_33 = arith.constant dense<0.000000e+00> : vector<24xf32>
    %81 = vector.multi_reduction <add>, %80, %cst_33 [1] : vector<24x128xf32> to vector<24xf32>
    %82 = vector.shape_cast %81 : vector<24xf32> to vector<24x1xf32>
    %83 = arith.mulf %69, %82 : vector<24x1xf32>
    %84 = vector.shape_cast %83 : vector<24x1xf32> to vector<1x24x1xf32>
    %cst_34 = arith.constant dense<0.000000e+00> : vector<1xf32>
    %85 = vector.multi_reduction <add>, %84, %cst_34 [1, 2] : vector<1x24x1xf32> to vector<1xf32>
    %86 = vector.shape_cast %85 : vector<1xf32> to vector<1x1x1xf32>
    %87 = vector.extract %86[0, 0, 0] : f32 from vector<1x1x1xf32>
    %88 = tpu.iota {dimensions = array<i32: 2>} : vector<1x8x128xi32>
    %c0_i32 = arith.constant 0 : i32
    %89 = vector.broadcast %c0_i32 : i32 to vector<1x8x128xi32>
    %90 = arith.cmpi eq, %88, %89 : vector<1x8x128xi32>
    %c1_i32 = arith.constant 1 : i32
    %91 = vector.broadcast %c1_i32 : i32 to vector<1x8x128xi32>
    %92 = arith.cmpi eq, %88, %91 : vector<1x8x128xi32>
    %cst_35 = arith.constant 0.000000e+00 : f32
    %93 = vector.broadcast %87 : f32 to vector<1x8x128xf32>
    %94 = vector.broadcast %cst_35 : f32 to vector<1x8x128xf32>
    %95 = arith.select %92, %93, %94 : vector<1x8x128xi1>, vector<1x8x128xf32>
    %96 = vector.broadcast %78 : f32 to vector<1x8x128xf32>
    %97 = arith.select %90, %96, %95 : vector<1x8x128xi1>, vector<1x8x128xf32>
    %c0_36 = arith.constant 0 : index
    %c0_37 = arith.constant 0 : index
    %c0_38 = arith.constant 0 : index
    %98 = vector.load %arg11[%c0_36, %c0_37, %c0_38] : memref<1x8x128xf32, #tpu.memory_space<vmem>>, vector<1x8x128xf32>
    tpu.vector_store %arg11[%c0_36, %c0_37, %c0_38], %97 {strides = array<i32>} : memref<1x8x128xf32, #tpu.memory_space<vmem>>, vector<1x8x128xf32>,
    return
  }
  func.func @transform_0(%arg0: i32, %arg1: memref<1xi32, #tpu.memory_space<smem>>) -> (i32, i32) {
    %c0_i32 = arith.constant 0 : i32
    %c0_i32_0 = arith.constant 0 : i32
    return %arg0, %c0_i32 : i32, i32
  }
  func.func @transform_1(%arg0: i32, %arg1: memref<1xi32, #tpu.memory_space<smem>>) -> (i32, i32) {
    %c0_i32 = arith.constant 0 : i32
    %c0_i32_0 = arith.constant 0 : i32
    return %arg0, %c0_i32 : i32, i32
  }
  func.func @transform_2(%arg0: i32, %arg1: memref<1xi32, #tpu.memory_space<smem>>) -> (i32, i32) {
    %c0_i32 = arith.constant 0 : i32
    %c0_i32_0 = arith.constant 0 : i32
    %c0_i32_1 = arith.constant 0 : i32
    return %c0_i32, %c0_i32_0 : i32, i32
  }
  func.func @transform_3(%arg0: i32, %arg1: memref<1xi32, #tpu.memory_space<smem>>) -> (i32, i32) {
    %c0_i32 = arith.constant 0 : i32
    %c0_i32_0 = arith.constant 0 : i32
    %c0_i32_1 = arith.constant 0 : i32
    return %c0_i32, %c0_i32_0 : i32, i32
  }
  func.func @transform_4(%arg0: i32, %arg1: memref<1xi32, #tpu.memory_space<smem>>) -> (i32, i32) {
    %c0_i32 = arith.constant 0 : i32
    %c0_i32_0 = arith.constant 0 : i32
    %c0_i32_1 = arith.constant 0 : i32
    return %c0_i32, %c0_i32_0 : i32, i32
  }
  func.func @transform_5(%arg0: i32, %arg1: memref<1xi32, #tpu.memory_space<smem>>) -> (i32, i32) {
    %c0_i32 = arith.constant 0 : i32
    %c0_i32_0 = arith.constant 0 : i32
    %c0_i32_1 = arith.constant 0 : i32
    return %c0_i32, %c0_i32_0 : i32, i32
  }
  func.func @transform_6(%arg0: i32, %arg1: memref<1xi32, #tpu.memory_space<smem>>) -> (i32, i32) {
    %c0_i32 = arith.constant 0 : i32
    %c0_i32_0 = arith.constant 0 : i32
    %c0_i32_1 = arith.constant 0 : i32
    return %c0_i32, %c0_i32_0 : i32, i32
  }
  func.func @transform_7(%arg0: i32, %arg1: memref<1xi32, #tpu.memory_space<smem>>) -> (i32, i32) {
    %c0_i32 = arith.constant 0 : i32
    %c0_i32_0 = arith.constant 0 : i32
    %c0_i32_1 = arith.constant 0 : i32
    return %c0_i32, %c0_i32_0 : i32, i32
  }
  func.func @transform_8(%arg0: i32, %arg1: memref<1xi32, #tpu.memory_space<smem>>) -> (i32, i32) {
    %c0_i32 = arith.constant 0 : i32
    %c0_i32_0 = arith.constant 0 : i32
    %c0_i32_1 = arith.constant 0 : i32
    return %c0_i32, %c0_i32_0 : i32, i32
  }
  func.func @transform_9(%arg0: i32, %arg1: memref<1xi32, #tpu.memory_space<smem>>) -> (i32, i32, i32) {
    %c0_i32 = arith.constant 0 : i32
    %c0_i32_0 = arith.constant 0 : i32
    %c0_i32_1 = arith.constant 0 : i32
    return %arg0, %c0_i32, %c0_i32_0 : i32, i32, i32
  }
}

</mosaic_0001>

<bundles_post_ra>
// kernel: tpu_custom_call.1
= control target key start
LH: loop header
LB: loop body
LE: loop exit
PB: predicated region body
PF: predicated region fallthrough
CT: control target
= control target key end

     0   :  { %16 = vsyncpa [#allocation5], 0  ;;  %s1821_s0 = inlined_call_operand.<no memory space> [shape: s32[1], index: 0, kind: input, shape index: {}]   ;;  %s1822_s1 = inlined_call_operand.hbm [shape: f32[24,128], index: 1, kind: input, shape index: {}]   ;;  %s1823_s2 = inlined_call_operand.hbm [shape: f32[24,128], index: 2, kind: input, shape index: {}]   ;;  %s1824_s3 = inlined_call_operand.hbm [shape: f32[128,128], index: 3, kind: input, shape index: {}]   ;;  %s1825_s4 = inlined_call_operand.hbm [shape: f32[128,128], index: 4, kind: input, shape index: {}]   ;;  %s1826_s5 = inlined_call_operand.hbm [shape: f32[128,128], index: 5, kind: input, shape index: {}]   ;;  %s1827_s6 = inlined_call_operand.hbm [shape: f32[128,128], index: 6, kind: input, shape index: {}]   ;;  %s1828_s7 = inlined_call_operand.hbm [shape: f32[128,128], index: 7, kind: input, shape index: {}]   ;;  %s1829_s8 = inlined_call_operand.hbm [shape: f32[128,128], index: 8, kind: input, shape index: {}]   ;;  %s1830_s9 = inlined_call_operand.vmem [shape: f32[8,128], index: 9, kind: input, shape index: {}]   ;;  %s1831_s10 = inlined_call_operand.hbm [shape: f32[1,8,128], index: 10, kind: output, shape index: {}]  }
   0x1   :  { %17 = vsyncpa [#allocation8], 0 }
   0x2   :  { %18 = vsyncpa [#allocation11], 0 }
   0x3   :  { %19 = vsyncpa [#allocation14], 0 }
   0x4   :  { %20 = vsyncpa [#allocation17], 0 }
   0x5   :  { %21 = vsyncpa [#allocation6], 0  ;;  %s1524_s13 = smov [#allocation7]   ;;  %s1525_s15 = smov [#allocation10]  }
   0x6   :  { %s39_s14 = sshll.u32 %s1524_s13, 4  ;;  %s63_s16 = sshll.u32 %s1525_s15, 4  ;;  %s40_s14 = int_to_ptr.vmem [resolvable:$true] %s39_s14  ;;  %s64_s16 = int_to_ptr.vmem [resolvable:$true] %s63_s16 }
   0x7   :  { %s1340_s17 = scalar_lea.vmem %s40_s14, 384  ;;  %p1345_p1 = scmp.lt.s32.totalorder %s40_s14, %s40_s14 }
   0x8   :  { %p1341_p0 = scmp.ne.s32.totalorder %s40_s14, %s1340_s17  ;;  %p1346_p2 = scmp.lt.s32.totalorder %s1340_s17, %s1340_s17 }
   0xa   :  { %p1347_p3 = por %p1346_p2, %p1345_p1 }
   0xc   :  { %p1348_p4 = pnand %p1347_p3, %p1341_p0 }
   0xe   :  { %1351 = shalt.err (!%p1348_p4)
}
   0xf   :  { %s1526_s18 = smov 128   ;;  %s1527_s19 = smov 8  }
  0x10   :  { %45 = dma.hbm_to_vmem [thread:$0]  %s1823_s2, 384, %s40_s14, [#allocation8], %s1526_s18, %s1526_s18, %s1527_s19  }
  0x11   :  { %s1360_s22 = scalar_lea.vmem %s64_s16, 2048  ;;  %p1365_p6 = scmp.lt.s32.totalorder %s64_s16, %s64_s16 }
  0x12   :  { %p1361_p5 = scmp.ne.s32.totalorder %s64_s16, %s1360_s22  ;;  %p1366_p7 = scmp.lt.s32.totalorder %s1360_s22, %s1360_s22 }
  0x14   :  { %p1367_p8 = por %p1366_p7, %p1365_p6 }
  0x16   :  { %p1368_p9 = pnand %p1367_p8, %p1361_p5 }
  0x18   :  { %1371 = shalt.err (!%p1368_p9)
}
  0x19   :  { %69 = dma.hbm_to_vmem [thread:$0]  %s1825_s4, 2048, %s64_s16, [#allocation11], %s1526_s18, %s1526_s18, %s1527_s19  }
  0x1a   :  { %s1528_s25 = smov [#allocation13]   ;;  %s1529_s27 = smov [#allocation4]  }
  0x1b   :  { %s87_s26 = sshll.u32 %s1528_s25, 4  ;;  %s27_s28 = sshll.u32 %s1529_s27, 4  ;;  %s88_s26 = int_to_ptr.vmem [resolvable:$true] %s87_s26  ;;  %s28_s28 = int_to_ptr.vmem [resolvable:$true] %s27_s28 }
  0x1c   :  { %s1380_s2 = scalar_lea.vmem %s88_s26, 2048  ;;  %p1385_p11 = scmp.lt.s32.totalorder %s88_s26, %s88_s26 }
  0x1d   :  { %p1381_p10 = scmp.ne.s32.totalorder %s88_s26, %s1380_s2  ;;  %p1386_p12 = scmp.lt.s32.totalorder %s1380_s2, %s1380_s2 }
  0x1f   :  { %p1387_p13 = por %p1386_p12, %p1385_p11 }
  0x21   :  { %p1388_p0 = pnand %p1387_p13, %p1381_p10 }
  0x23   :  { %1391 = shalt.err (!%p1388_p0)
}
  0x24   :  { %93 = dma.hbm_to_vmem [thread:$0]  %s1827_s6, 2048, %s88_s26, [#allocation14], %s1526_s18, %s1526_s18, %s1527_s19  }
  0x25   :  { %s1400_s4 = scalar_lea.vmem %s28_s28, 384  ;;  %p1405_p2 = scmp.lt.s32.totalorder %s28_s28, %s28_s28 }
  0x26   :  { %p1401_p1 = scmp.ne.s32.totalorder %s28_s28, %s1400_s4  ;;  %p1406_p3 = scmp.lt.s32.totalorder %s1400_s4, %s1400_s4 }
  0x28   :  { %p1407_p4 = por %p1406_p3, %p1405_p2 }
  0x2a   :  { %p1408_p5 = pnand %p1407_p4, %p1401_p1 }
  0x2c   :  { %1411 = shalt.err (!%p1408_p5)
}
  0x2d   :  { %33 = dma.hbm_to_vmem [thread:$0]  %s1822_s1, 384, %s28_s28, [#allocation5], %s1526_s18, %s1526_s18, %s1527_s19  }
  0x2e   :  { %s1530_s13 = smov [#allocation9]   ;;  %s1531_s15 = smov [#allocation12]  }
  0x2f   :  { %s51_s14 = sshll.u32 %s1530_s13, 4  ;;  %s75_s16 = sshll.u32 %s1531_s15, 4  ;;  %s52_s14 = int_to_ptr.vmem [resolvable:$true] %s51_s14  ;;  %s76_s16 = int_to_ptr.vmem [resolvable:$true] %s75_s16 }
  0x30   :  { %s1420_s6 = scalar_lea.vmem %s52_s14, 2048  ;;  %p1425_p7 = scmp.lt.s32.totalorder %s52_s14, %s52_s14 }
  0x31   :  { %p1421_p6 = scmp.ne.s32.totalorder %s52_s14, %s1420_s6  ;;  %p1426_p8 = scmp.lt.s32.totalorder %s1420_s6, %s1420_s6 }
  0x33   :  { %p1427_p9 = por %p1426_p8, %p1425_p7 }
  0x35   :  { %p1428_p10 = pnand %p1427_p9, %p1421_p6 }
  0x37   :  { %1431 = shalt.err (!%p1428_p10)
}
  0x38   :  { %57 = dma.hbm_to_vmem [thread:$0]  %s1824_s3, 2048, %s52_s14, [#allocation8], %s1526_s18, %s1526_s18, %s1527_s19  }
  0x39   :  { %s1440_s1 = scalar_lea.vmem %s76_s16, 2048  ;;  %p1445_p12 = scmp.lt.s32.totalorder %s76_s16, %s76_s16 }
  0x3a   :  { %p1441_p11 = scmp.ne.s32.totalorder %s76_s16, %s1440_s1  ;;  %p1446_p13 = scmp.lt.s32.totalorder %s1440_s1, %s1440_s1 }
  0x3c   :  { %p1447_p0 = por %p1446_p13, %p1445_p12 }
  0x3e   :  { %p1448_p1 = pnand %p1447_p0, %p1441_p11 }
  0x40   :  { %1451 = shalt.err (!%p1448_p1)
}
  0x41   :  { %81 = dma.hbm_to_vmem [thread:$0]  %s1826_s5, 2048, %s76_s16, [#allocation11], %s1526_s18, %s1526_s18, %s1527_s19  }
  0x42   :  { %s1532_s23 = smov [#allocation15]   ;;  %s1533_s25 = smov [#allocation16]  }
  0x43   :  { %s99_s24 = sshll.u32 %s1532_s23, 4  ;;  %s111_s26 = sshll.u32 %s1533_s25, 4  ;;  %s100_s24 = int_to_ptr.vmem [resolvable:$true] %s99_s24  ;;  %s112_s26 = int_to_ptr.vmem [resolvable:$true] %s111_s26 }
  0x44   :  { %s1460_s3 = scalar_lea.vmem %s100_s24, 2048  ;;  %p1465_p3 = scmp.lt.s32.totalorder %s100_s24, %s100_s24 }
  0x45   :  { %p1461_p2 = scmp.ne.s32.totalorder %s100_s24, %s1460_s3  ;;  %p1466_p4 = scmp.lt.s32.totalorder %s1460_s3, %s1460_s3 }
  0x47   :  { %p1467_p5 = por %p1466_p4, %p1465_p3 }
  0x49   :  { %p1468_p6 = pnand %p1467_p5, %p1461_p2 }
  0x4b   :  { %1471 = shalt.err (!%p1468_p6)
}
  0x4c   :  { %105 = dma.hbm_to_vmem [thread:$0]  %s1828_s7, 2048, %s100_s24, [#allocation14], %s1526_s18, %s1526_s18, %s1527_s19  }
  0x4d   :  { %s1480_s5 = scalar_lea.vmem %s112_s26, 2048  ;;  %p1485_p8 = scmp.lt.s32.totalorder %s112_s26, %s112_s26 }
  0x4e   :  { %p1481_p7 = scmp.ne.s32.totalorder %s112_s26, %s1480_s5  ;;  %p1486_p9 = scmp.lt.s32.totalorder %s1480_s5, %s1480_s5 }
  0x50   :  { %p1487_p10 = por %p1486_p9, %p1485_p8 }
  0x52   :  { %p1488_p11 = pnand %p1487_p10, %p1481_p7 }
  0x54   :  { %1491 = shalt.err (!%p1488_p11)
}
  0x55   :  { %117 = dma.hbm_to_vmem [thread:$0]  %s1829_s8, 2048, %s112_s26, [#allocation17], %s1526_s18, %s1526_s18, %s1527_s19  }
  0x56   :  { %1512 = dma.done.wait [#allocation5], 384  }
  0x57   :  { %1513 = vsyncadd [#allocation5], 4294966912 }
  0x58   :  { %1514 = dma.done.wait [#allocation8], 2432  }
  0x59   :  { %1515 = vsyncadd [#allocation8], 4294964864 }
  0x5a   :  { %1516 = dma.done.wait [#allocation11], 4096  }
  0x5b   :  { %1517 = vsyncadd [#allocation11], 4294963200 }
  0x5c   :  { %1518 = dma.done.wait [#allocation14], 4096  }
  0x5d   :  { %1519 = vsyncadd [#allocation14], 4294963200 }
  0x5e   :  { %1520 = dma.done.wait [#allocation17], 2048  }
  0x5f   :  { %1521 = vsyncadd [#allocation17], 4294965248  ;;  %v1534_v0 = vmov 0.0   ;;  %vm1535_vm0 = vmmov 0   ;;  %v163_v1 = vld [vmem:[#allocation9 + $0x78] sm:$0xff]  ;;  %v162_v2 = vld [vmem:[#allocation9 + $0x70] sm:$0xff]  ;;  %v196_v50 = vlaneseq }
  0x60   :  { %1045 = vmatprep.subr.mxu0 %v1534_v0  ;;  %1077 = vmatprep.mubr.msk.f32.mxu0 %vm1535_vm0, %v1534_v0  ;;  %v161_v3 = vld [vmem:[#allocation9 + $0x68] sm:$0xff]  ;;  %v160_v4 = vld [vmem:[#allocation9 + $0x60] sm:$0xff]  ;;  %v159_v5 = vld [vmem:[#allocation9 + $0x58] sm:$0xff]  ;;  %vm855_vm4 = vcmask 7168   ;;  %s1536_s19 = smov [#allocation18]  }
  0x61   :  { %1086 = vmatprep.subr.mxu1 %v1534_v0  ;;  %1118 = vmatprep.mubr.msk.f32.mxu1 %vm1535_vm0, %v1534_v0  ;;  %v179_v6 = vld [vmem:[#allocation10 + $0x78] sm:$0xff]  ;;  %v178_v7 = vld [vmem:[#allocation10 + $0x70] sm:$0xff]  ;;  %v177_v9 = vld [vmem:[#allocation10 + $0x68] sm:$0xff]  ;;  %v1699_v51 = vshrl.u32 %v196_v50, 7  ;;  %s915_s30 = sshll.u32 %s1536_s19, 4  ;;  %s916_s30 = int_to_ptr.vmem [resolvable:$true] %s915_s30 }
  0x62   :  { %1046 = vmatpush3.msra.mxu0 %v163_v1  ;;  %1087 = vmatpush3.msra.mxu1 %v179_v6  ;;  %v158_v8 = vld [vmem:[#allocation9 + $0x50] sm:$0xff]  ;;  %v157_v10 = vld [vmem:[#allocation9 + $0x48] sm:$0xff]  ;;  %v176_v11 = vld [vmem:[#allocation10 + $0x60] sm:$0xff]  ;;  %s1492_s11 = scalar_lea.vmem %s916_s30, 128  ;;  %p1497_p13 = scmp.lt.s32.totalorder %s916_s30, %s916_s30 }
  0x63   :  { %1047 = vmatprep.subr.mxu0 %v1534_v0  ;;  %1088 = vmatprep.subr.mxu1 %v1534_v0  ;;  %v156_v12 = vld [vmem:[#allocation9 + $0x40] sm:$0xff]  ;;  %v175_v13 = vld [vmem:[#allocation10 + $0x58] sm:$0xff]  ;;  %v174_v15 = vld [vmem:[#allocation10 + $0x50] sm:$0xff]  ;;  %v198_v52 = vsub.s32 0, %v1699_v51  ;;  %p1493_p12 = scmp.ne.s32.totalorder %s916_s30, %s1492_s11  ;;  %p1498_p0 = scmp.lt.s32.totalorder %s1492_s11, %s1492_s11 }
  0x64   :  { %1048 = vmatpush3.msra.mxu0 %v162_v2  ;;  %1089 = vmatpush3.msra.mxu1 %v178_v7  ;;  %v155_v14 = vld [vmem:[#allocation9 + $0x38] sm:$0xff]  ;;  %v154_v16 = vld [vmem:[#allocation9 + $0x30] sm:$0xff]  ;;  %v173_v17 = vld [vmem:[#allocation10 + $0x48] sm:$0xff] }
  0x65   :  { %1049 = vmatprep.subr.mxu0 %v1534_v0  ;;  %1090 = vmatprep.subr.mxu1 %v1534_v0  ;;  %v153_v18 = vld [vmem:[#allocation9 + $0x28] sm:$0xff]  ;;  %v172_v19 = vld [vmem:[#allocation10 + $0x40] sm:$0xff]  ;;  %v171_v21 = vld [vmem:[#allocation10 + $0x38] sm:$0xff]  ;;  %p1499_p1 = por %p1498_p0, %p1497_p13 }
  0x66   :  { %1050 = vmatpush3.msra.mxu0 %v161_v3  ;;  %1091 = vmatpush3.msra.mxu1 %v177_v9  ;;  %v152_v20 = vld [vmem:[#allocation9 + $0x20] sm:$0xff]  ;;  %v151_v22 = vld [vmem:[#allocation9 + $0x18] sm:$0xff]  ;;  %v170_v23 = vld [vmem:[#allocation10 + $0x30] sm:$0xff] }
  0x67   :  { %1051 = vmatprep.subr.mxu0 %v1534_v0  ;;  %1092 = vmatprep.subr.mxu1 %v1534_v0  ;;  %v150_v24 = vld [vmem:[#allocation9 + $0x10] sm:$0xff]  ;;  %v169_v25 = vld [vmem:[#allocation10 + $0x28] sm:$0xff]  ;;  %v168_v27 = vld [vmem:[#allocation10 + $0x20] sm:$0xff]  ;;  %p1500_p2 = pnand %p1499_p1, %p1493_p12 }
  0x68   :  { %1052 = vmatpush3.msra.mxu0 %v160_v4  ;;  %1093 = vmatpush3.msra.mxu1 %v176_v11  ;;  %v149_v26 = vld [vmem:[#allocation9 + $0x8] sm:$0xff]  ;;  %v148_v28 = vld [vmem:[#allocation9] sm:$0xff]  ;;  %v167_v29 = vld [vmem:[#allocation10 + $0x18] sm:$0xff] }
  0x69   :  { %1053 = vmatprep.subr.mxu0 %v1534_v0  ;;  %1094 = vmatprep.subr.mxu1 %v1534_v0  ;;  %v145_v30 = vld [vmem:[#allocation4] sm:$0xff]  ;;  %v146_v32 = vld [vmem:[#allocation4 + $0x8] sm:$0xff]  ;;  %v147_v33 = vld [vmem:[#allocation4 + $0x10] sm:$0xff] }
  0x6a   :  { %1054 = vmatpush3.msra.mxu0 %v159_v5  ;;  %1095 = vmatpush3.msra.mxu1 %v175_v13  ;;  %v166_v31 = vld [vmem:[#allocation10 + $0x10] sm:$0xff]  ;;  %v165_v34 = vld [vmem:[#allocation10 + $0x8] sm:$0xff]  ;;  %v164_v35 = vld [vmem:[#allocation10] sm:$0xff] }
  0x6b   :  { %1055 = vmatprep.subr.mxu0 %v1534_v0  ;;  %1096 = vmatprep.subr.mxu1 %v1534_v0  ;;  %v195_v36 = vld [vmem:[#allocation12 + $0x78] sm:$0xff]  ;;  %v194_v37 = vld [vmem:[#allocation12 + $0x70] sm:$0xff]  ;;  %v193_v38 = vld [vmem:[#allocation12 + $0x68] sm:$0xff] }
  0x6c   :  { %1056 = vmatpush3.msra.mxu0 %v158_v8  ;;  %1097 = vmatpush3.msra.mxu1 %v174_v15  ;;  %v192_v39 = vld [vmem:[#allocation12 + $0x60] sm:$0xff]  ;;  %v191_v40 = vld [vmem:[#allocation12 + $0x58] sm:$0xff]  ;;  %v190_v41 = vld [vmem:[#allocation12 + $0x50] sm:$0xff] }
  0x6d   :  { %1057 = vmatprep.subr.mxu0 %v1534_v0  ;;  %1098 = vmatprep.subr.mxu1 %v1534_v0  ;;  %v189_v42 = vld [vmem:[#allocation12 + $0x48] sm:$0xff]  ;;  %v188_v43 = vld [vmem:[#allocation12 + $0x40] sm:$0xff]  ;;  %v187_v44 = vld [vmem:[#allocation12 + $0x38] sm:$0xff] }
  0x6e   :  { %1058 = vmatpush3.msra.mxu0 %v157_v10  ;;  %1099 = vmatpush3.msra.mxu1 %v173_v17  ;;  %v186_v45 = vld [vmem:[#allocation12 + $0x30] sm:$0xff]  ;;  %v185_v46 = vld [vmem:[#allocation12 + $0x28] sm:$0xff]  ;;  %v184_v47 = vld [vmem:[#allocation12 + $0x20] sm:$0xff] }
  0x6f   :  { %1059 = vmatprep.subr.mxu0 %v1534_v0  ;;  %1100 = vmatprep.subr.mxu1 %v1534_v0  ;;  %v183_v48 = vld [vmem:[#allocation12 + $0x18] sm:$0xff]  ;;  %v182_v49 = vld [vmem:[#allocation12 + $0x10] sm:$0xff]  ;;  %v470_v2 = vld [vmem:[#allocation13 + $0x68] sm:$0xff] }
  0x70   :  { %1060 = vmatpush3.msra.mxu0 %v156_v12  ;;  %1101 = vmatpush3.msra.mxu1 %v172_v19  ;;  %v1705_v53 = vld [vmem:[%s1830_s9] sm:$0xff]  ;;  %v472_v59 = vld [vmem:[#allocation13 + $0x78] sm:$0xff]  ;;  %v469_v5 = vld [vmem:[#allocation13 + $0x60] sm:$0xff] }
  0x71   :  { %1061 = vmatprep.subr.mxu0 %v1534_v0  ;;  %1102 = vmatprep.subr.mxu1 %v1534_v0  ;;  %v199_v54 = vrot.slane %v1705_v53, %v198_v52  ;;  %v471_v62 = vld [vmem:[#allocation13 + $0x70] sm:$0xff]  ;;  %v468_v8 = vld [vmem:[#allocation13 + $0x58] sm:$0xff]  ;;  %v466_v10 = vld [vmem:[#allocation13 + $0x48] sm:$0xff] }
  0x72   :  { %1062 = vmatpush3.msra.mxu0 %v155_v14  ;;  %1103 = vmatpush3.msra.mxu1 %v171_v21  ;;  %v467_v9 = vld [vmem:[#allocation13 + $0x50] sm:$0xff]  ;;  %v465_v11 = vld [vmem:[#allocation13 + $0x40] sm:$0xff]  ;;  %v464_v12 = vld [vmem:[#allocation13 + $0x38] sm:$0xff] }
  0x73   :  { %1063 = vmatprep.subr.mxu0 %v1534_v0  ;;  %1104 = vmatprep.subr.mxu1 %v1534_v0  ;;  %v463_v13 = vld [vmem:[#allocation13 + $0x30] sm:$0xff]  ;;  %v462_v14 = vld [vmem:[#allocation13 + $0x28] sm:$0xff]  ;;  %v461_v15 = vld [vmem:[#allocation13 + $0x20] sm:$0xff] }
  0x74   :  { %1064 = vmatpush3.msra.mxu0 %v154_v16  ;;  %1105 = vmatpush3.msra.mxu1 %v170_v23  ;;  %v460_v16 = vld [vmem:[#allocation13 + $0x18] sm:$0xff]  ;;  %v459_v17 = vld [vmem:[#allocation13 + $0x10] sm:$0xff]  ;;  %v457_v19 = vld [vmem:[#allocation13] sm:$0xff] }
  0x75   :  { %1065 = vmatprep.subr.mxu0 %v1534_v0  ;;  %1106 = vmatprep.subr.mxu1 %v1534_v0  ;;  %v455_v21 = vld [vmem:[#allocation7 + $0x8] sm:$0xff]  ;;  %v181_v23 = vld [vmem:[#allocation12 + $0x8] sm:$0xff]  ;;  %v477_v52 = vld [vmem:[#allocation15 + $0x20] sm:$0xff] }
  0x76   :  { %1066 = vmatpush3.msra.mxu0 %v153_v18  ;;  %1107 = vmatpush3.msra.mxu1 %v169_v25  ;;  %v458_v18 = vld [vmem:[#allocation13 + $0x8] sm:$0xff]  ;;  %v285_v25 = vsub.s32 1, %v1699_v51 }
  0x77   :  { %1067 = vmatprep.subr.mxu0 %v1534_v0  ;;  %1108 = vmatprep.subr.mxu1 %v1534_v0 }
  0x78   :  { %1068 = vmatpush3.msra.mxu0 %v152_v20  ;;  %1109 = vmatpush3.msra.mxu1 %v168_v27  ;;  %v454_v20 = vld [vmem:[#allocation7] sm:$0xff] }
  0x79   :  { %1069 = vmatprep.subr.mxu0 %v1534_v0  ;;  %1110 = vmatprep.subr.mxu1 %v1534_v0 }
  0x7a   :  { %1070 = vmatpush3.msra.mxu0 %v151_v22  ;;  %1111 = vmatpush3.msra.mxu1 %v167_v29  ;;  %v456_v22 = vld [vmem:[#allocation7 + $0x10] sm:$0xff] }
  0x7b   :  { %1071 = vmatprep.subr.mxu0 %v1534_v0  ;;  %1112 = vmatprep.subr.mxu1 %v1534_v0 }
  0x7c   :  { %1072 = vmatpush3.msra.mxu0 %v150_v24  ;;  %1113 = vmatpush3.msra.mxu1 %v166_v31  ;;  %v180_v24 = vld [vmem:[#allocation12] sm:$0xff]  ;;  %v488_v31 = vld [vmem:[#allocation15 + $0x78] sm:$0xff] }
  0x7d   :  { %1073 = vmatprep.subr.mxu0 %v1534_v0  ;;  %1114 = vmatprep.subr.mxu1 %v1534_v0 }
  0x7e   :  { %1074 = vmatpush3.msra.mxu0 %v149_v26  ;;  %1115 = vmatpush3.msra.mxu1 %v165_v34  ;;  %v286_v26 = vrot.slane %v1705_v53, %v285_v25  ;;  %v487_v34 = vld [vmem:[#allocation15 + $0x70] sm:$0xff]  ;;  %v372_v25 = vsub.s32 2, %v1699_v51 }
  0x7f   :  { %1075 = vmatprep.subr.mxu0 %v1534_v0  ;;  %1116 = vmatprep.subr.mxu1 %v1534_v0 }
  0x80   :  { %1076 = vmatpush3.msra.mxu0 %v148_v28  ;;  %1117 = vmatpush3.msra.mxu1 %v164_v35 }
  0x81   :  { %1078 = vmatmul.mubr.f32.vlgmr.msra.gmra.mxu0 %v145_v30  ;;  %1127 = vmatprep.subr.mxu0 %v1534_v0 }
  0x82   :  { %1080 = vmatprep.mubr.msk.f32.mxu0 %vm1535_vm0, %v1534_v0  ;;  %1168 = vmatprep.subr.mxu1 %v1534_v0 }
  0x83   :  { %1128 = vmatpush3.msra.mxu0 %v195_v36 }
  0x84   :  { %1129 = vmatprep.subr.mxu0 %v1534_v0 }
  0x85   :  { %1081 = vmatmul.mubr.f32.gmra.mxu0 %v146_v32 }
  0x86   :  { %1083 = vmatprep.mubr.msk.f32.mxu0 %vm1535_vm0, %v1534_v0  ;;  %1130 = vmatpush3.msra.mxu0 %v194_v37  ;;  %v486_v37 = vld [vmem:[#allocation15 + $0x68] sm:$0xff] }
  0x87   :  { %1131 = vmatprep.subr.mxu0 %v1534_v0 }
  0x88   :  { %1132 = vmatpush3.msra.mxu0 %v193_v38 }
  0x89   :  { %1084 = vmatmul.mubr.f32.gmra.mxu0 %v147_v33  ;;  %1133 = vmatprep.subr.mxu0 %v1534_v0 }
  0x8a   :  { %1159 = vmatprep.mubr.msk.f32.mxu0 %vm1535_vm0, %v1534_v0  ;;  %1134 = vmatpush3.msra.mxu0 %v192_v39 }
  0x8b   :  { %1135 = vmatprep.subr.mxu0 %v1534_v0 }
  0x8c   :  { %1136 = vmatpush3.msra.mxu0 %v191_v40  ;;  %v485_v40 = vld [vmem:[#allocation15 + $0x60] sm:$0xff] }
  0x8d   :  { %1137 = vmatprep.subr.mxu0 %v1534_v0 }
  0x8e   :  { %1138 = vmatpush3.msra.mxu0 %v190_v41 }
  0x8f   :  { %1139 = vmatprep.subr.mxu0 %v1534_v0 }
  0x90   :  { %1140 = vmatpush3.msra.mxu0 %v189_v42 }
  0x91   :  { %1141 = vmatprep.subr.mxu0 %v1534_v0 }
  0x92   :  { %1142 = vmatpush3.msra.mxu0 %v188_v43  ;;  %v484_v43 = vld [vmem:[#allocation15 + $0x58] sm:$0xff] }
  0x93   :  { %1143 = vmatprep.subr.mxu0 %v1534_v0 }
  0x94   :  { %1144 = vmatpush3.msra.mxu0 %v187_v44  ;;  %v483_v44 = vld [vmem:[#allocation15 + $0x50] sm:$0xff] }
  0x95   :  { %1145 = vmatprep.subr.mxu0 %v1534_v0 }
  0x96   :  { %1146 = vmatpush3.msra.mxu0 %v186_v45  ;;  %v482_v45 = vld [vmem:[#allocation15 + $0x48] sm:$0xff] }
  0x97   :  { %1147 = vmatprep.subr.mxu0 %v1534_v0 }
  0x98   :  { %1148 = vmatpush3.msra.mxu0 %v185_v46  ;;  %v481_v46 = vld [vmem:[#allocation15 + $0x40] sm:$0xff] }
  0x99   :  { %1149 = vmatprep.subr.mxu0 %v1534_v0 }
  0x9a   :  { %1150 = vmatpush3.msra.mxu0 %v184_v47  ;;  %v480_v47 = vld [vmem:[#allocation15 + $0x38] sm:$0xff] }
  0x9b   :  { %1151 = vmatprep.subr.mxu0 %v1534_v0 }
  0x9c   :  { %1152 = vmatpush3.msra.mxu0 %v183_v48  ;;  %v479_v48 = vld [vmem:[#allocation15 + $0x30] sm:$0xff] }
  0x9d   :  { %1153 = vmatprep.subr.mxu0 %v1534_v0 }
  0x9e   :  { %1154 = vmatpush3.msra.mxu0 %v182_v49  ;;  %v478_v49 = vld [vmem:[#allocation15 + $0x28] sm:$0xff] }
  0x9f   :  { %1155 = vmatprep.subr.mxu0 %v1534_v0 }
  0xa0   :  { %1156 = vmatpush3.msra.mxu0 %v181_v23  ;;  %v490_v23 = vld [vmem:[#allocation16 + $0x8] sm:$0xff] }
  0xa1   :  { %1157 = vmatprep.subr.mxu0 %v1534_v0 }
  0xa2   :  { %1158 = vmatpush3.msra.mxu0 %v180_v24  ;;  %v489_v24 = vld [vmem:[#allocation16] sm:$0xff] }
  0xa3   :  { %1209 = vmatprep.subr.mxu0 %v1534_v0 }
 0x141   :  { %v266_v55 = vpop.f32.mrf.mxu0 }
 0x142   :  { %v267_v56 = vadd.f32 %v266_v55, %v199_v54  ;;  %v476_v55 = vld [vmem:[#allocation15 + $0x18] sm:$0xff] }
 0x143   :  { %v1079_v57 = vpop.f32.mrf.mxu0 }
 0x144   :  { %v280_v58 = vmax.f32 %v267_v56, 0.0  ;;  %v475_v57 = vld [vmem:[#allocation15 + $0x10] sm:$0xff] }
 0x145   :  { %v271_v60 = vpop.f32.mrf.mxu0 }
 0x146   :  { %v272_v61 = vadd.f32 %v271_v60, %v199_v54  ;;  %1119 = vmatmul.mubr.f32.vlgmr.msra.gmra.mxu1 %v280_v58  ;;  %v474_v58 = vld [vmem:[#allocation15 + $0x8] sm:$0xff] }
 0x147   :  { %1169 = vmatpush3.msra.mxu1 %v472_v59  ;;  %v1082_v63 = vpop.f32.mrf.mxu0  ;;  %1121 = vmatprep.mubr.msk.f32.mxu1 %vm1535_vm0, %v1534_v0 }
 0x148   :  { %v281_v1 = vmax.f32 %v272_v61, 0.0  ;;  %1170 = vmatprep.subr.mxu1 %v1534_v0  ;;  %v473_v61 = vld [vmem:[#allocation15] sm:$0xff] }
 0x149   :  { %1171 = vmatpush3.msra.mxu1 %v471_v62  ;;  %v276_v3 = vpop.f32.mrf.mxu0 }
 0x14a   :  { %v277_v4 = vadd.f32 %v276_v3, %v199_v54  ;;  %1172 = vmatprep.subr.mxu1 %v1534_v0  ;;  %1122 = vmatmul.mubr.f32.gmra.mxu1 %v281_v1  ;;  %v507_v54 = vsub.s32 3, %v1699_v51 }
 0x14b   :  { %1173 = vmatpush3.msra.mxu1 %v470_v2  ;;  %1124 = vmatprep.mubr.msk.f32.mxu1 %vm1535_vm0, %v1534_v0  ;;  %v1085_v6 = vpop.f32.mrf.mxu0 }
 0x14c   :  { %v282_v7 = vmax.f32 %v277_v4, 0.0  ;;  %1174 = vmatprep.subr.mxu1 %v1534_v0  ;;  %v508_v56 = vrot.slane %v1705_v53, %v507_v54 }
 0x14d   :  { %1175 = vmatpush3.msra.mxu1 %v469_v5 }
 0x14e   :  { %1176 = vmatprep.subr.mxu1 %v1534_v0  ;;  %1125 = vmatmul.mubr.f32.gmra.mxu1 %v282_v7 }
 0x14f   :  { %1177 = vmatpush3.msra.mxu1 %v468_v8  ;;  %1200 = vmatprep.mubr.msk.f32.mxu1 %vm1535_vm0, %v1534_v0 }
 0x150   :  { %1178 = vmatprep.subr.mxu1 %v1534_v0 }
 0x151   :  { %1179 = vmatpush3.msra.mxu1 %v467_v9  ;;  %v504_v9 = vld [vmem:[#allocation16 + $0x78] sm:$0xff] }
 0x152   :  { %1180 = vmatprep.subr.mxu1 %v1534_v0 }
 0x153   :  { %1181 = vmatpush3.msra.mxu1 %v466_v10  ;;  %v503_v10 = vld [vmem:[#allocation16 + $0x70] sm:$0xff] }
 0x154   :  { %1182 = vmatprep.subr.mxu1 %v1534_v0 }
 0x155   :  { %1183 = vmatpush3.msra.mxu1 %v465_v11  ;;  %v502_v11 = vld [vmem:[#allocation16 + $0x68] sm:$0xff] }
 0x156   :  { %1184 = vmatprep.subr.mxu1 %v1534_v0 }
 0x157   :  { %1185 = vmatpush3.msra.mxu1 %v464_v12  ;;  %v501_v12 = vld [vmem:[#allocation16 + $0x60] sm:$0xff] }
 0x158   :  { %1186 = vmatprep.subr.mxu1 %v1534_v0 }
 0x159   :  { %1187 = vmatpush3.msra.mxu1 %v463_v13  ;;  %v500_v13 = vld [vmem:[#allocation16 + $0x58] sm:$0xff] }
 0x15a   :  { %1188 = vmatprep.subr.mxu1 %v1534_v0 }
 0x15b   :  { %1189 = vmatpush3.msra.mxu1 %v462_v14  ;;  %v499_v14 = vld [vmem:[#allocation16 + $0x50] sm:$0xff] }
 0x15c   :  { %1190 = vmatprep.subr.mxu1 %v1534_v0 }
 0x15d   :  { %1191 = vmatpush3.msra.mxu1 %v461_v15  ;;  %v498_v15 = vld [vmem:[#allocation16 + $0x48] sm:$0xff] }
 0x15e   :  { %1192 = vmatprep.subr.mxu1 %v1534_v0 }
 0x15f   :  { %1193 = vmatpush3.msra.mxu1 %v460_v16  ;;  %v497_v16 = vld [vmem:[#allocation16 + $0x40] sm:$0xff] }
 0x160   :  { %1194 = vmatprep.subr.mxu1 %v1534_v0 }
 0x161   :  { %1195 = vmatpush3.msra.mxu1 %v459_v17  ;;  %v496_v17 = vld [vmem:[#allocation16 + $0x38] sm:$0xff] }
 0x162   :  { %1196 = vmatprep.subr.mxu1 %v1534_v0 }
 0x163   :  { %1197 = vmatpush3.msra.mxu1 %v458_v18  ;;  %v495_v18 = vld [vmem:[#allocation16 + $0x30] sm:$0xff] }
 0x164   :  { %1198 = vmatprep.subr.mxu1 %v1534_v0 }
 0x165   :  { %1199 = vmatpush3.msra.mxu1 %v457_v19  ;;  %v494_v19 = vld [vmem:[#allocation16 + $0x28] sm:$0xff] }
 0x166   :  { %1201 = vmatmul.mubr.f32.vlgmr.msra.gmra.mxu1 %v454_v20  ;;  %1250 = vmatprep.subr.mxu1 %v1534_v0  ;;  %v493_v20 = vld [vmem:[#allocation16 + $0x20] sm:$0xff] }
 0x167   :  { %1203 = vmatprep.mubr.msk.f32.mxu1 %vm1535_vm0, %v1534_v0  ;;  %1251 = vmatpush3.msra.mxu1 %v504_v9 }
 0x168   :  { %1252 = vmatprep.subr.mxu1 %v1534_v0 }
 0x169   :  { %1253 = vmatpush3.msra.mxu1 %v503_v10 }
 0x16a   :  { %1204 = vmatmul.mubr.f32.gmra.mxu1 %v455_v21  ;;  %1254 = vmatprep.subr.mxu1 %v1534_v0  ;;  %v492_v21 = vld [vmem:[#allocation16 + $0x18] sm:$0xff] }
 0x16b   :  { %1206 = vmatprep.mubr.msk.f32.mxu1 %vm1535_vm0, %v1534_v0  ;;  %1255 = vmatpush3.msra.mxu1 %v502_v11 }
 0x16c   :  { %1256 = vmatprep.subr.mxu1 %v1534_v0 }
 0x16d   :  { %1257 = vmatpush3.msra.mxu1 %v501_v12 }
 0x16e   :  { %1207 = vmatmul.mubr.f32.gmra.mxu1 %v456_v22  ;;  %1258 = vmatprep.subr.mxu1 %v1534_v0  ;;  %v491_v22 = vld [vmem:[#allocation16 + $0x10] sm:$0xff] }
 0x16f   :  { %1282 = vmatprep.mubr.msk.f32.mxu1 %vm1535_vm0, %v1534_v0  ;;  %1259 = vmatpush3.msra.mxu1 %v500_v13 }
 0x170   :  { %1260 = vmatprep.subr.mxu1 %v1534_v0 }
 0x171   :  { %1261 = vmatpush3.msra.mxu1 %v499_v14 }
 0x172   :  { %1262 = vmatprep.subr.mxu1 %v1534_v0 }
 0x173   :  { %1263 = vmatpush3.msra.mxu1 %v498_v15 }
 0x174   :  { %1264 = vmatprep.subr.mxu1 %v1534_v0 }
 0x175   :  { %1265 = vmatpush3.msra.mxu1 %v497_v16 }
 0x176   :  { %1266 = vmatprep.subr.mxu1 %v1534_v0 }
 0x177   :  { %1267 = vmatpush3.msra.mxu1 %v496_v17 }
 0x178   :  { %1268 = vmatprep.subr.mxu1 %v1534_v0 }
 0x179   :  { %1269 = vmatpush3.msra.mxu1 %v495_v18 }
 0x17a   :  { %1270 = vmatprep.subr.mxu1 %v1534_v0 }
 0x17b   :  { %1271 = vmatpush3.msra.mxu1 %v494_v19 }
 0x17c   :  { %1272 = vmatprep.subr.mxu1 %v1534_v0 }
 0x17d   :  { %1273 = vmatpush3.msra.mxu1 %v493_v20 }
 0x17e   :  { %1274 = vmatprep.subr.mxu1 %v1534_v0 }
 0x17f   :  { %1275 = vmatpush3.msra.mxu1 %v492_v21 }
 0x180   :  { %1276 = vmatprep.subr.mxu1 %v1534_v0 }
 0x181   :  { %1277 = vmatpush3.msra.mxu1 %v491_v22 }
 0x182   :  { %1278 = vmatprep.subr.mxu1 %v1534_v0 }
 0x183   :  { %1279 = vmatpush3.msra.mxu1 %v490_v23 }
 0x184   :  { %1280 = vmatprep.subr.mxu1 %v1534_v0 }
 0x185   :  { %1281 = vmatpush3.msra.mxu1 %v489_v24 }
 0x206   :  { %v353_v27 = vpop.f32.mrf.mxu1 }
 0x207   :  { %v354_v28 = vadd.f32 %v353_v27, %v286_v26 }
 0x208   :  { %v1120_v29 = vpop.f32.mrf.mxu1 }
 0x209   :  { %v367_v30 = vmax.f32 %v354_v28, 0.0 }
 0x20a   :  { %v358_v32 = vpop.f32.mrf.mxu1 }
 0x20b   :  { %v359_v33 = vadd.f32 %v358_v32, %v286_v26  ;;  %1160 = vmatmul.mubr.f32.vlgmr.msra.gmra.mxu0 %v367_v30 }
 0x20c   :  { %1210 = vmatpush3.msra.mxu0 %v488_v31  ;;  %v1123_v35 = vpop.f32.mrf.mxu1  ;;  %1162 = vmatprep.mubr.msk.f32.mxu0 %vm1535_vm0, %v1534_v0 }
 0x20d   :  { %v368_v36 = vmax.f32 %v359_v33, 0.0  ;;  %1211 = vmatprep.subr.mxu0 %v1534_v0 }
 0x20e   :  { %1212 = vmatpush3.msra.mxu0 %v487_v34  ;;  %v363_v38 = vpop.f32.mrf.mxu1 }
 0x20f   :  { %v364_v39 = vadd.f32 %v363_v38, %v286_v26  ;;  %1213 = vmatprep.subr.mxu0 %v1534_v0  ;;  %1163 = vmatmul.mubr.f32.gmra.mxu0 %v368_v36  ;;  %v373_v26 = vrot.slane %v1705_v53, %v372_v25  ;;  %v594_v36 = vsub.s32 4, %v1699_v51 }
 0x210   :  { %1214 = vmatpush3.msra.mxu0 %v486_v37  ;;  %1165 = vmatprep.mubr.msk.f32.mxu0 %vm1535_vm0, %v1534_v0  ;;  %v1126_v41 = vpop.f32.mrf.mxu1 }
 0x211   :  { %v369_v42 = vmax.f32 %v364_v39, 0.0  ;;  %1215 = vmatprep.subr.mxu0 %v1534_v0  ;;  %v595_v37 = vrot.slane %v1705_v53, %v594_v36 }
 0x212   :  { %1216 = vmatpush3.msra.mxu0 %v485_v40 }
 0x213   :  { %1217 = vmatprep.subr.mxu0 %v1534_v0  ;;  %1166 = vmatmul.mubr.f32.gmra.mxu0 %v369_v42 }
 0x214   :  { %1218 = vmatpush3.msra.mxu0 %v484_v43  ;;  %1241 = vmatprep.mubr.msk.f32.mxu0 %vm1535_vm0, %v1534_v0 }
 0x215   :  { %1219 = vmatprep.subr.mxu0 %v1534_v0 }
 0x216   :  { %1220 = vmatpush3.msra.mxu0 %v483_v44 }
 0x217   :  { %1221 = vmatprep.subr.mxu0 %v1534_v0 }
 0x218   :  { %1222 = vmatpush3.msra.mxu0 %v482_v45 }
 0x219   :  { %1223 = vmatprep.subr.mxu0 %v1534_v0 }
 0x21a   :  { %1224 = vmatpush3.msra.mxu0 %v481_v46 }
 0x21b   :  { %1225 = vmatprep.subr.mxu0 %v1534_v0 }
 0x21c   :  { %1226 = vmatpush3.msra.mxu0 %v480_v47 }
 0x21d   :  { %1227 = vmatprep.subr.mxu0 %v1534_v0 }
 0x21e   :  { %1228 = vmatpush3.msra.mxu0 %v479_v48 }
 0x21f   :  { %1229 = vmatprep.subr.mxu0 %v1534_v0 }
 0x220   :  { %1230 = vmatpush3.msra.mxu0 %v478_v49 }
 0x221   :  { %1231 = vmatprep.subr.mxu0 %v1534_v0 }
 0x222   :  { %1232 = vmatpush3.msra.mxu0 %v477_v52 }
 0x223   :  { %1233 = vmatprep.subr.mxu0 %v1534_v0 }
 0x224   :  { %1234 = vmatpush3.msra.mxu0 %v476_v55 }
 0x225   :  { %1235 = vmatprep.subr.mxu0 %v1534_v0 }
 0x226   :  { %v575_v59 = vpop.f32.mrf.mxu1  ;;  %1236 = vmatpush3.msra.mxu0 %v475_v57 }
 0x227   :  { %v576_v60 = vadd.f32 %v575_v59, %v508_v56  ;;  %1237 = vmatprep.subr.mxu0 %v1534_v0 }
 0x228   :  { %v1202_v62 = vpop.f32.mrf.mxu1  ;;  %1238 = vmatpush3.msra.mxu0 %v474_v58 }
 0x229   :  { %v589_v63 = vmax.f32 %v576_v60, 0.0  ;;  %1239 = vmatprep.subr.mxu0 %v1534_v0  ;;  %v681_v60 = vsub.s32 5, %v1699_v51 }
 0x22a   :  { %v580_v1 = vpop.f32.mrf.mxu1  ;;  %1240 = vmatpush3.msra.mxu0 %v473_v61 }
 0x22b   :  { %v581_v2 = vadd.f32 %v580_v1, %v508_v56  ;;  %1242 = vmatmul.mubr.f32.vlgmr.msra.gmra.mxu0 %v589_v63  ;;  %v682_v63 = vrot.slane %v1705_v53, %v681_v60 }
 0x22c   :  { %v1205_v3 = vpop.f32.mrf.mxu1  ;;  %1244 = vmatprep.mubr.msk.f32.mxu0 %vm1535_vm0, %v1534_v0 }
 0x22d   :  { %v590_v4 = vmax.f32 %v581_v2, 0.0 }
 0x22e   :  { %v585_v5 = vpop.f32.mrf.mxu1 }
 0x22f   :  { %v586_v6 = vadd.f32 %v585_v5, %v508_v56  ;;  %1245 = vmatmul.mubr.f32.gmra.mxu0 %v590_v4 }
 0x230   :  { %v1208_v7 = vpop.f32.mrf.mxu1  ;;  %1247 = vmatprep.mubr.msk.f32.mxu0 %vm1535_vm0, %v1534_v0 }
 0x231   :  { %v591_v8 = vmax.f32 %v586_v6, 0.0 }
 0x233   :  { %1248 = vmatmul.mubr.f32.gmra.mxu0 %v591_v8 }
 0x2cb   :  { %v440_v27 = vpop.f32.mrf.mxu0 }
 0x2cc   :  { %v441_v28 = vadd.f32 %v440_v27, %v373_v26 }
 0x2cd   :  { %v1161_v29 = vpop.f32.mrf.mxu0 }
 0x2ce   :  { %763 = vmax.xlane.f32.xlu0 %v441_v28 }
 0x2cf   :  { %v445_v30 = vpop.f32.mrf.mxu0 }
 0x2d0   :  { %v446_v31 = vadd.f32 %v445_v30, %v373_v26 }
 0x2d1   :  { %v1164_v32 = vpop.f32.mrf.mxu0 }
 0x2d2   :  { %765 = vmax.xlane.f32.xlu0 %v446_v31  ;;  %v872_v32 = vsub.s32 6, %v1699_v51 }
 0x2d3   :  { %v450_v33 = vpop.f32.mrf.mxu0 }
 0x2d4   :  { %v451_v34 = vadd.f32 %v450_v33, %v373_v26 }
 0x2d5   :  { %v1167_v35 = vpop.f32.mrf.mxu0 }
 0x2d6   :  { %767 = vmax.xlane.f32.xlu1 %v451_v34 }
 0x2eb   :  { %v662_v38 = vpop.f32.mrf.mxu0 }
 0x2ec   :  { %v663_v39 = vadd.f32 %v662_v38, %v595_v37  ;;  %v873_v38 = vrot.slane %v1705_v53, %v872_v32  ;;  %v830_v53 = vstv %s1821_s0 }
 0x2ed   :  { %v1243_v40 = vpop.f32.mrf.mxu0  ;;  %vm831_vm2 = vcmp.lt.s32.totalorder %v1699_v51, %v830_v53 }
 0x2ee   :  { %v676_v41 = vmax.f32 %v663_v39, 0.0 }
 0x2ef   :  { %v667_v42 = vpop.f32.mrf.mxu0 }
 0x2f0   :  { %v668_v43 = vadd.f32 %v667_v42, %v595_v37  ;;  %1283 = vmatmul.mubr.f32.vlgmr.msra.gmra.mxu1 %v676_v41 }
 0x2f1   :  { %v1246_v44 = vpop.f32.mrf.mxu0  ;;  %1285 = vmatprep.mubr.msk.f32.mxu1 %vm1535_vm0, %v1534_v0 }
 0x2f2   :  { %v677_v45 = vmax.f32 %v668_v43, 0.0 }
 0x2f3   :  { %v672_v46 = vpop.f32.mrf.mxu0 }
 0x2f4   :  { %v673_v47 = vadd.f32 %v672_v46, %v595_v37  ;;  %1286 = vmatmul.mubr.f32.gmra.mxu1 %v677_v45  ;;  %v823_v45 = vadd.s32 8, %v1699_v51 }
 0x2f5   :  { %v1249_v48 = vpop.f32.mrf.mxu0  ;;  %1288 = vmatprep.mubr.msk.f32.mxu1 %vm1535_vm0, %v1534_v0 }
 0x2f6   :  { %v678_v49 = vmax.f32 %v673_v47, 0.0  ;;  %vm832_vm1 = vcmp.lt.s32.totalorder %v823_v45, %v830_v53  ;;  %v824_v48 = vadd.s32 16, %v1699_v51 }
 0x2f8   :  { %1289 = vmatmul.mubr.f32.gmra.mxu1 %v678_v49  ;;  %vm833_vm3 = vcmp.lt.s32.totalorder %v824_v48, %v830_v53 }
 0x357   :  { %v764_v52 = vpop.xlane.xlu0 %763 }
 0x358   :  { %v769_v54 = vsub.f32 %v441_v28, %v764_v52 }
 0x35a   :  { %v772_v58 = vmul.f32 1.442695, %v769_v54 }
 0x35b   :  { %v766_v55 = vpop.xlane.xlu0 %765 }
 0x35c   :  { %v770_v57 = vsub.f32 %v446_v31, %v766_v55  ;;  %1308 = vpow2.f32 %v772_v58  ;;  %v929_v55 = vsel %vm832_vm1, 1.0, %v1534_v0 }
 0x35e   :  { %v774_v61 = vmul.f32 1.442695, %v770_v57 }
 0x35f   :  { %v768_v56 = vpop.xlane.xlu1 %767 }
 0x360   :  { %v771_v59 = vsub.f32 %v451_v34, %v768_v56  ;;  %1310 = vpow2.f32 %v774_v61  ;;  %v928_v56 = vsel %vm831_vm2, 1.0, %v1534_v0 }
 0x362   :  { %v776_v62 = vmul.f32 1.442695, %v771_v59 }
 0x364   :  { %1312 = vpow2.f32 %v776_v62 }
 0x369   :  { %v1309_v9 = vpop.eup %1308 }
 0x36d   :  { %v1311_v11 = vpop.eup %1310 }
 0x371   :  { %v1313_v12 = vpop.eup %1312 }
 0x3b0   :  { %v749_v1 = vpop.f32.mrf.mxu1 }
 0x3b1   :  { %v750_v2 = vadd.f32 %v749_v1, %v682_v63  ;;  %v930_v1 = vsel %vm833_vm3, 1.0, %v1534_v0 }
 0x3b2   :  { %v1284_v3 = vpop.f32.mrf.mxu1 }
 0x3b3   :  { %790 = vmax.xlane.f32.xlu1 %v750_v2 }
 0x3b4   :  { %v754_v4 = vpop.f32.mrf.mxu1 }
 0x3b5   :  { %v755_v5 = vadd.f32 %v754_v4, %v682_v63 }
 0x3b6   :  { %v1287_v6 = vpop.f32.mrf.mxu1 }
 0x3b7   :  { %792 = vmax.xlane.f32.xlu0 %v755_v5 }
 0x3b8   :  { %v759_v7 = vpop.f32.mrf.mxu1 }
 0x3b9   :  { %v760_v8 = vadd.f32 %v759_v7, %v682_v63 }
 0x3ba   :  { %v1290_v10 = vpop.f32.mrf.mxu1 }
 0x3bb   :  { %778 = vadd.xlane.f32.xlu0 %v1309_v9  ;;  %794 = vmax.xlane.f32.xlu1 %v760_v8 }
 0x3bf   :  { %782 = vadd.xlane.f32.xlu0 %v1313_v12  ;;  %780 = vadd.xlane.f32.xlu1 %v1311_v11 }
 0x43c   :  { %v791_v13 = vpop.xlane.xlu1 %790 }
 0x43d   :  { %v796_v14 = vsub.f32 %v750_v2, %v791_v13 }
 0x43f   :  { %v799_v15 = vmul.f32 1.442695, %v796_v14 }
 0x440   :  { %v1792_v16 = vpop.xlane.xlu0 %792 }
 0x441   :  { %1314 = vpow2.f32 %v799_v15  ;;  %v797_v17 = vsub.f32 %v755_v5, %v1792_v16 }
 0x443   :  { %v801_v18 = vmul.f32 1.442695, %v797_v17 }
 0x444   :  { %v779_v19 = vpop.xlane.xlu0 %778  ;;  %v1795_v20 = vpop.xlane.xlu1 %794 }
 0x445   :  { %1316 = vpow2.f32 %v801_v18  ;;  %v798_v21 = vsub.f32 %v760_v8, %v1795_v20 }
 0x446   :  { %1318 = vrcp.f32 %v779_v19 }
 0x447   :  { %v803_v22 = vmul.f32 1.442695, %v798_v21 }
 0x448   :  { %v783_v23 = vpop.xlane.xlu0 %782  ;;  %v781_v24 = vpop.xlane.xlu1 %780 }
 0x449   :  { %1320 = vpow2.f32 %v803_v22 }
 0x44a   :  { %1322 = vrcp.f32 %v783_v23 }
 0x44b   :  { %1324 = vrcp.f32 %v781_v24 }
 0x44e   :  { %v1315_v25 = vpop.eup %1314 }
 0x44f   :  { %805 = vadd.xlane.f32.xlu1 %v1315_v25 }
 0x452   :  { %v1317_v26 = vpop.eup %1316 }
 0x453   :  { %v1319_v27 = vpop.eup %1318  ;;  %807 = vadd.xlane.f32.xlu0 %v1317_v26 }
 0x454   :  { %v787_v28 = vmul.f32 %v1319_v27, %v1309_v9 }
 0x456   :  { %v1321_v29 = vpop.eup %1320  ;;  %v840_v30 = vmul.f32 %v787_v28, %v750_v2  ;;  %v874_v40 = vmul.f32 %v873_v38, %v787_v28 }
 0x457   :  { %v1323_v31 = vpop.eup %1322  ;;  %809 = vadd.xlane.f32.xlu1 %v1321_v29 }
 0x458   :  { %v1325_v33 = vpop.eup %1324  ;;  %843 = vadd.xlane.f32.xlu0 %v840_v30  ;;  %v789_v34 = vmul.f32 %v1323_v31, %v1313_v12 }
 0x459   :  { %v788_v35 = vmul.f32 %v1325_v33, %v1311_v11 }
 0x45a   :  { %v842_v36 = vmul.f32 %v789_v34, %v760_v8  ;;  %v876_v41 = vmul.f32 %v873_v38, %v789_v34 }
 0x45b   :  { %v841_v37 = vmul.f32 %v788_v35, %v755_v5  ;;  %v875_v39 = vmul.f32 %v873_v38, %v788_v35 }
 0x45c   :  { %847 = vadd.xlane.f32.xlu0 %v842_v36  ;;  %v901_v36 = vand.u32 127, %v196_v50 }
 0x45d   :  { %845 = vadd.xlane.f32.xlu1 %v841_v37 }
 0x45e   :  { %vm903_vm5 = vcmp.eq.s32.totalorder %v901_v36, 1  ;;  %vm902_vm6 = vcmp.eq.s32.totalorder %v901_v36, 0 }
 0x460   :  { %879 = vadd.xlane.f32.xlu0 %v875_v39 }
 0x461   :  { %877 = vadd.xlane.f32.xlu1 %v874_v40 }
 0x465   :  { %881 = vadd.xlane.f32.xlu1 %v876_v41 }
 0x4d8   :  { %v806_v42 = vpop.xlane.xlu1 %805 }
 0x4d9   :  { %1326 = vlog2.f32 %v806_v42 }
 0x4dc   :  { %v808_v43 = vpop.xlane.xlu0 %807 }
 0x4dd   :  { %1328 = vlog2.f32 %v808_v43 }
 0x4e0   :  { %v810_v44 = vpop.xlane.xlu1 %809 }
 0x4e1   :  { %v844_v46 = vpop.xlane.xlu0 %843  ;;  %1330 = vlog2.f32 %v810_v44 }
 0x4e5   :  { %v848_v47 = vpop.xlane.xlu0 %847 }
 0x4e6   :  { %v1327_v49 = vpop.eup %1326  ;;  %v846_v52 = vpop.xlane.xlu1 %845 }
 0x4e7   :  { %v812_v54 = vmul.f32 0.6931472, %v1327_v49 }
 0x4e9   :  { %v817_v57 = vadd.f32 %v812_v54, %v791_v13  ;;  %v880_v58 = vpop.xlane.xlu0 %879 }
 0x4ea   :  { %v1329_v59 = vpop.eup %1328  ;;  %v878_v60 = vpop.xlane.xlu1 %877  ;;  %v884_v61 = vmul.f32 %v929_v55, %v880_v58 }
 0x4eb   :  { %v814_v62 = vmul.f32 0.6931472, %v1329_v59  ;;  %v883_v63 = vmul.f32 %v928_v56, %v878_v60  ;;  %v849_v2 = vsub.f32 %v817_v57, %v844_v46 }
 0x4ec   :  { %v887_v4 = vsel %vm855_vm4, %v884_v61, 0.0 }
 0x4ed   :  { %v818_v51 = vadd.f32 %v814_v62, %v1792_v16  ;;  %v886_v3 = vsel %vm855_vm4, %v883_v63, 0.0  ;;  %v852_v12 = vmul.f32 %v928_v56, %v849_v2 }
 0x4ee   :  { %v1331_v5 = vpop.eup %1330  ;;  %v882_v6 = vpop.xlane.xlu1 %881  ;;  %v888_v10 = vadd.f32 %v887_v4, %v886_v3 }
 0x4ef   :  { %v816_v7 = vmul.f32 0.6931472, %v1331_v5  ;;  %v850_v8 = vsub.f32 %v818_v51, %v846_v52  ;;  %v885_v9 = vmul.f32 %v930_v1, %v882_v6  ;;  %v856_v18 = vsel %vm855_vm4, %v852_v12, 0.0 }
 0x4f1   :  { %v819_v11 = vadd.f32 %v816_v7, %v1795_v20  ;;  %v853_v13 = vmul.f32 %v929_v55, %v850_v8  ;;  %v889_v14 = vsel %vm855_vm4, %v885_v9, 0.0 }
 0x4f2   :  { %v890_v0 = vadd.f32 %v889_v14, %v888_v10 }
 0x4f3   :  { %v851_v15 = vsub.f32 %v819_v11, %v848_v47  ;;  %v857_v16 = vsel %vm855_vm4, %v853_v13, 0.0 }
 0x4f4   :  { %891 = vadd.xlane.f32.xlu1 %v890_v0  ;;  %v858_v19 = vadd.f32 %v857_v16, %v856_v18 }
 0x4f5   :  { %v854_v17 = vmul.f32 %v930_v1, %v851_v15 }
 0x4f7   :  { %v859_v21 = vsel %vm855_vm4, %v854_v17, 0.0 }
 0x4f8   :  { %v860_v22 = vadd.f32 %v859_v21, %v858_v19 }
 0x4fa   :  { %861 = vadd.xlane.f32.xlu0 %v860_v22 }
 0x57d   :  { %v892_v23 = vpop.xlane.xlu1 %891 }
 0x57e   :  { %v893_v24 = vrot.slane %v892_v23, 4 }
 0x580   :  { %v894_v20 = vadd.f32 %v893_v24, %v892_v23 }
 0x582   :  { %v895_v25 = vrot.slane %v894_v20, 2 }
 0x583   :  { %v862_v26 = vpop.xlane.xlu0 %861 }
 0x584   :  { %v863_v27 = vrot.slane %v862_v26, 4  ;;  %v896_v29 = vadd.f32 %v895_v25, %v894_v20 }
 0x586   :  { %v864_v28 = vadd.f32 %v863_v27, %v862_v26  ;;  %v897_v32 = vrot.slane %v896_v29, 1 }
 0x588   :  { %v865_v30 = vrot.slane %v864_v28, 2  ;;  %v898_v35 = vadd.f32 %v897_v32, %v896_v29 }
 0x58a   :  { %v866_v31 = vadd.f32 %v865_v30, %v864_v28 }
 0x58c   :  { %v867_v33 = vrot.slane %v866_v31, 1 }
 0x58e   :  { %v868_v34 = vadd.f32 %v867_v33, %v866_v31 }
 0x590   :  { %1291 = vpush %v868_v34 }
 0x591   :  { %1293 = vpush %v898_v35 }
 0x5c1   :  { %s1292_s0 = spop %1291 }
 0x5c2   :  { %v906_v37 = vstv %s1292_s0  ;;  %s1294_s4 = spop %1293 }
 0x5c3   :  { %v904_v38 = vstv %s1294_s4 }
 0x5c4   :  { %v905_v39 = vsel %vm903_vm5, %v904_v38, 0.0 }
 0x5c5   :  { %v907_v40 = vsel %vm902_vm6, %v906_v37, %v905_v39 }
 0x5c6   :  { %908 = vst [vmem:[#allocation18] sm:$0xff] %v907_v40 }
 0x5c7   :  { %1503 = shalt.err (!%p1500_p2)
}
 0x5c8   :  { %918 = dma.vmem_to_hbm [thread:$0]  %s916_s30, 128, %s1831_s10, [#allocation6]  }
 0x5c9   :  { %1522 = dma.done.wait [#allocation6], 128  }
 0x5ca   :  { %1523 = vsyncadd [#allocation6], 4294967168 }
 0x5cb   :  { %922 = vsyncpa [#allocation5], 1 }
 0x5cc   :  { %923 = vsyncpa [#allocation8], 1 }
 0x5cd   :  { %924 = vsyncpa [#allocation11], 1 }
 0x5ce   :  { %925 = vsyncpa [#allocation14], 1 }
 0x5cf   :  { %926 = vsyncpa [#allocation17], 1 }
 0x5d0   :  { %927 = vsyncpa [#allocation6], 1 }

</bundles_post_ra>
